<compile_context>
chip_gen: v7x
topology: tpu7x:2x2x1
jax: 0.10.0
libtpu: 0.0.40
codegen_flags: <defaults>
</compile_context>

<pallas_src>
import math

import jax
import jax.numpy as jnp
from jax.experimental import pallas as pl
from jax.experimental.pallas import tpu as pltpu


def _attention_body(x_ref, w_ref, m_ref, o_ref, a_ref):
    # x_ref: (BB, S, D)   w_ref: (1, D)   m_ref: (BB, S) or None
    # o_ref: (BB, D)      a_ref: (BB, S)
    x = x_ref[...].astype(jnp.float32)                       # (BB, S, D)
    w = w_ref[...].astype(jnp.float32)                       # (1, D)

    # eij[b, s] = sum_d x[b, s, d] * w[d]  -> lane-dense (BB, S) result
    eij = jnp.sum(x * w[None, :, :], axis=-1)                # (BB, S)
    a = jnp.exp(jnp.tanh(eij))                               # bounded in [1/e, e]
    if m_ref is not None:
        a = a * m_ref[...].astype(jnp.float32)

    denom = jnp.sum(a, axis=-1, keepdims=True)               # (BB, 1)
    a = a / denom + 1e-10          # NOTE: eps added AFTER division (torch parity)

    # pooled[b, :] = sum_s a[b, s] * x[b, s, :] -> batched (1,S)@(S,D) on the MXU
    pooled = jnp.einsum(
        "bqs,bsd->bqd",
        a[:, None, :],
        x,
        preferred_element_type=jnp.float32,
        precision=jax.lax.Precision.HIGHEST,
    )                                                        # (BB, 1, D)

    a_ref[...] = a.astype(a_ref.dtype)                       # lane-dense store
    o_ref[...] = pooled[:, 0, :].astype(o_ref.dtype)


def _attention_kernel_nomask(x_ref, w_ref, o_ref, a_ref):
    _attention_body(x_ref, w_ref, None, o_ref, a_ref)


def _attention_kernel_mask(x_ref, w_ref, m_ref, o_ref, a_ref):
    _attention_body(x_ref, w_ref, m_ref, o_ref, a_ref)


def _pick_batch_block(B, S, D, has_mask, itemsize=4,
                      budget_bytes=10 * 1024 * 1024):
    """Batches per grid step, sized so the double-buffered x block stays well
    under the scoped VMEM limit on v5e/v6e/v7x."""
    per_batch = S * D * itemsize + (S * itemsize if has_mask else 0)
    bb = max(1, budget_bytes // per_batch)
    if bb >= B:
        # Whole batch fits: optionally split in two so v7x's two TensorCores
        # both get work (only when the split keeps sublane-friendly blocks).
        if B >= 16 and (B // 2) % 8 == 0:
            return B // 2
        return B
    if bb >= 8:
        bb = (bb // 8) * 8   # sublane-friendly block for the (BB, D)/(BB, S) outputs
    # TODO(synk): for very large S*D (bb < 8 here), add an S-tiling grid axis with
    # an accumulate-then-normalize scheme instead of shrinking the batch block.
    return int(bb)


def attention_forward(x, weight, mask=None):
    """x: (B, S, D), weight: (D, 1), mask: optional (B, S) or (B, S, 1).

    Returns (pooled (B, D), attention weights (B, S, 1))."""
    B, S, D = x.shape
    w = jnp.asarray(weight, dtype=x.dtype).reshape(1, D)      # lane-dense weight
    has_mask = mask is not None
    if has_mask:
        m = jnp.asarray(mask, dtype=x.dtype).reshape(B, S)    # lane-dense mask

    BB = _pick_batch_block(B, S, D, has_mask, itemsize=x.dtype.itemsize)
    grid = (pl.cdiv(B, BB),)

    in_specs = [
        pl.BlockSpec((BB, S, D), lambda i: (i, 0, 0)),
        pl.BlockSpec((1, D), lambda i: (0, 0)),
    ]
    args = [x, w]
    if has_mask:
        in_specs.append(pl.BlockSpec((BB, S), lambda i: (i, 0)))
        args.append(m)
        kernel = _attention_kernel_mask
    else:
        kernel = _attention_kernel_nomask

    pooled, a = pl.pallas_call(
        kernel,
        out_shape=(
            jax.ShapeDtypeStruct((B, D), x.dtype),
            jax.ShapeDtypeStruct((B, S), x.dtype),
        ),
        grid=grid,
        in_specs=in_specs,
        out_specs=(
            pl.BlockSpec((BB, D), lambda i: (i, 0)),
            pl.BlockSpec((BB, S), lambda i: (i, 0)),
        ),
        compiler_params=pltpu.CompilerParams(
            dimension_semantics=("parallel",),
            vmem_limit_bytes=48 * 1024 * 1024,
        ),
    )(*args)
    # torch returns the attention weights unsqueezed to (B, S, 1)
    return pooled, a[..., None]


def attention_reference(x, weight, mask=None):
    """Pure-JAX mirror of the torch forward, for correctness checking."""
    B, S, D = x.shape
    eij = jnp.einsum(
        "bsd,do->bs", x, weight, precision=jax.lax.Precision.HIGHEST
    )
    a = jnp.exp(jnp.tanh(eij))
    if mask is not None:
        a = a * mask
    a = a / jnp.sum(a, axis=1, keepdims=True) + 1e-10
    a = a[..., None]
    return jnp.sum(x * a, axis=1), a


def xavier_uniform_weight(key, feature_dim):
    # nn.init.xavier_uniform_ on a (feature_dim, 1) tensor.
    bound = math.sqrt(6.0 / (feature_dim + 1))
    return jax.random.uniform(
        key, (feature_dim, 1), dtype=jnp.float32, minval=-bound, maxval=bound
    )


if __name__ == "__main__":
    B, S, D = 2, 8, 32  # batch, step_dim, feature_dim
    key = jax.random.PRNGKey(0)
    kx, kw = jax.random.split(key)

    x = jax.random.normal(kx, (B, S, D), dtype=jnp.float32)
    weight = xavier_uniform_weight(kw, D)

    # --- no-mask path ---
    pooled, attn = attention_forward(x, weight)
    jax.block_until_ready((pooled, attn))
    pooled_ref, attn_ref = attention_reference(x, weight)
    assert pooled.shape == (B, D) and attn.shape == (B, S, 1)
    assert jnp.allclose(pooled, pooled_ref, atol=1e-5, rtol=1e-5)
    assert jnp.allclose(attn, attn_ref, atol=1e-6, rtol=1e-5)

    # --- masked path ---
    lens = jnp.array([5, 8], dtype=jnp.int32)
    mask = (jnp.arange(S)[None, :] < lens[:, None]).astype(jnp.float32)  # (B, S)
    pooled_m, attn_m = attention_forward(x, weight, mask)
    jax.block_until_ready((pooled_m, attn_m))
    pooled_m_ref, attn_m_ref = attention_reference(x, weight, mask)
    assert jnp.allclose(pooled_m, pooled_m_ref, atol=1e-5, rtol=1e-5)
    assert jnp.allclose(attn_m, attn_m_ref, atol=1e-6, rtol=1e-5)

    print("KERNEL_OK")
</pallas_src>

<mosaic_0001>
module attributes {stable_mosaic.version = 11 : i64} {
  func.func @_attention_kernel_nomask(%arg0: i32, %arg1: memref<2x8x32xf32, #tpu.memory_space<vmem>>, %arg2: memref<1x32xf32, #tpu.memory_space<vmem>>, %arg3: memref<2x32xf32, #tpu.memory_space<vmem>>, %arg4: memref<2x8xf32, #tpu.memory_space<vmem>>) attributes {dimension_semantics = [#tpu.dimension_semantics<parallel>], iteration_bounds = array<i64: 1>, scalar_prefetch = 0 : i64, scratch_operands = 0 : i64, tpu.core_type = #tpu.core_type<tc>, window_params = [{transform_indices = @transform_0, window_bounds = array<i64: 2, 8, 32>}, {pipeline_mode = #tpu.pipeline_mode<synchronous>, transform_indices = @transform_1, window_bounds = array<i64: 1, 32>}, {transform_indices = @transform_2, window_bounds = array<i64: 2, 32>}, {transform_indices = @transform_3, window_bounds = array<i64: 2, 8>}]} {
    %c0 = arith.constant 0 : index
    %c0_0 = arith.constant 0 : index
    %c0_1 = arith.constant 0 : index
    %0 = vector.load %arg1[%c0, %c0_0, %c0_1] : memref<2x8x32xf32, #tpu.memory_space<vmem>>, vector<2x8x32xf32>
    %c0_2 = arith.constant 0 : index
    %c0_3 = arith.constant 0 : index
    %1 = vector.load %arg2[%c0_2, %c0_3] : memref<1x32xf32, #tpu.memory_space<vmem>>, vector<1x32xf32>
    %2 = vector.shape_cast %1 : vector<1x32xf32> to vector<1x1x32xf32>
    %3 = vector.broadcast %2 : vector<1x1x32xf32> to vector<2x8x32xf32>
    %4 = arith.mulf %0, %3 : vector<2x8x32xf32>
    %cst = arith.constant dense<0.000000e+00> : vector<2x8xf32>
    %5 = vector.multi_reduction <add>, %4, %cst [2] : vector<2x8x32xf32> to vector<2x8xf32>
    %6 = math.tanh %5 : vector<2x8xf32>
    %7 = math.exp %6 : vector<2x8xf32>
    %cst_4 = arith.constant dense<0.000000e+00> : vector<2xf32>
    %8 = vector.multi_reduction <add>, %7, %cst_4 [1] : vector<2x8xf32> to vector<2xf32>
    %9 = vector.shape_cast %8 : vector<2xf32> to vector<2x1xf32>
    %10 = vector.broadcast %9 : vector<2x1xf32> to vector<2x8xf32>
    %11 = arith.divf %7, %10 : vector<2x8xf32>
    %cst_5 = arith.constant 1.000000e-10 : f32
    %12 = vector.broadcast %cst_5 : f32 to vector<2x8xf32>
    %13 = arith.addf %11, %12 : vector<2x8xf32>
    %14 = vector.shape_cast %13 : vector<2x8xf32> to vector<2x1x8xf32>
    "tpu.trace_start"() <{level = 10 : i32, message = "bqs,bsd->bqd"}> : () -> ()
    %cst_6 = arith.constant dense<0.000000e+00> : vector<2x1x32xf32>
    %15 = tpu.matmul %14, %0, %cst_6 {dimension_numbers = #tpu.dot_dimension_numbers<[2], [1], [1], [2], [0, 0, 0, 1, 1, 2], [0], [0]>, precision = #tpu.contract_precision<fp32>} : vector<2x1x8xf32>, vector<2x8x32xf32>, vector<2x1x32xf32> -> vector<2x1x32xf32>
    "tpu.trace_stop"() : () -> ()
    %c0_7 = arith.constant 0 : index
    %c0_8 = arith.constant 0 : index
    %16 = vector.load %arg4[%c0_7, %c0_8] : memref<2x8xf32, #tpu.memory_space<vmem>>, vector<2x8xf32>
    tpu.vector_store %arg4[%c0_7, %c0_8], %13 {strides = array<i32>} : memref<2x8xf32, #tpu.memory_space<vmem>>, vector<2x8xf32>,
    %17 = vector.shape_cast %15 : vector<2x1x32xf32> to vector<2x32xf32>
    %c0_9 = arith.constant 0 : index
    %c0_10 = arith.constant 0 : index
    %18 = vector.load %arg3[%c0_9, %c0_10] : memref<2x32xf32, #tpu.memory_space<vmem>>, vector<2x32xf32>
    tpu.vector_store %arg3[%c0_9, %c0_10], %17 {strides = array<i32>} : memref<2x32xf32, #tpu.memory_space<vmem>>, vector<2x32xf32>,
    return
  }
  func.func @transform_0(%arg0: i32) -> (i32, i32, i32) {
    %c0_i32 = arith.constant 0 : i32
    %c0_i32_0 = arith.constant 0 : i32
    %c0_i32_1 = arith.constant 0 : i32
    return %arg0, %c0_i32, %c0_i32_0 : i32, i32, i32
  }
  func.func @transform_1(%arg0: i32) -> (i32, i32) {
    %c0_i32 = arith.constant 0 : i32
    %c0_i32_0 = arith.constant 0 : i32
    %c0_i32_1 = arith.constant 0 : i32
    return %c0_i32, %c0_i32_0 : i32, i32
  }
  func.func @transform_2(%arg0: i32) -> (i32, i32) {
    %c0_i32 = arith.constant 0 : i32
    %c0_i32_0 = arith.constant 0 : i32
    return %arg0, %c0_i32 : i32, i32
  }
  func.func @transform_3(%arg0: i32) -> (i32, i32) {
    %c0_i32 = arith.constant 0 : i32
    %c0_i32_0 = arith.constant 0 : i32
    return %arg0, %c0_i32 : i32, i32
  }
}

</mosaic_0001>

<bundles_post_ra>
// kernel: tpu_custom_call.1
= control target key start
LH: loop header
LB: loop body
LE: loop exit
PB: predicated region body
PF: predicated region fallthrough
CT: control target
= control target key end

     0   :  { %9 = vsyncpa [#allocation3], 0  ;;  %s1365_s0 = inlined_call_operand.hbm [shape: f32[2,8,32], index: 0, kind: input, shape index: {}]   ;;  %s1366_s1 = inlined_call_operand.vmem [shape: f32[1,32], index: 1, kind: input, shape index: {}]   ;;  %s1367_s2 = inlined_call_operand.hbm [shape: f32[2,32], index: 2, kind: output, shape index: {0}]   ;;  %s1368_s3 = inlined_call_operand.hbm [shape: f32[2,8], index: 3, kind: output, shape index: {1}]  }
   0x1   :  { %10 = vsyncpa [#allocation4], 0 }
   0x2   :  { %11 = vsyncpa [#allocation7], 0  ;;  %s1240_s12 = smov [#allocation2]   ;;  %s1168_s16 = scalar_lea.hbm %s1365_s0, 256 }
   0x3   :  { %s17_s13 = sshll.u32 %s1240_s12, 4  ;;  %p1169_p0 = scmp.ne.s32.totalorder %s1365_s0, %s1168_s16  ;;  %s18_s13 = int_to_ptr.vmem [resolvable:$true] %s17_s13 }
   0x4   :  { %p1172_p1 = scmp.lt.u32.totalorder %s1168_s16, %s1365_s0 }
   0x6   :  { %p1174_p2 = pnand %p1172_p1, %p1169_p0 }
   0x8   :  { %1177 = shalt.err (!%p1174_p2)
}
   0x9   :  { %s1178_s21 = scalar_lea.vmem %s18_s13, 256  ;;  %p1183_p4 = scmp.lt.s32.totalorder %s18_s13, %s18_s13 }
   0xa   :  { %p1179_p3 = scmp.ne.s32.totalorder %s18_s13, %s1178_s21  ;;  %p1184_p5 = scmp.lt.s32.totalorder %s1178_s21, %s1178_s21 }
   0xc   :  { %p1185_p6 = por %p1184_p5, %p1183_p4 }
   0xe   :  { %p1186_p7 = pnand %p1185_p6, %p1179_p3 }
  0x10   :  { %1189 = shalt.err (!%p1186_p7)
}
  0x11   :  { %s1241_s22 = smov 128   ;;  %s1242_s23 = smov 8  }
  0x12   :  { %23 = dma.hbm_to_vmem [thread:$0]  %s1365_s0, 256, %s18_s13, [#allocation3], %s1241_s22, %s1241_s22, %s1242_s23  }
  0x13   :  { %1234 = dma.done.wait [#allocation3], 256  }
  0x14   :  { %1235 = vsyncadd [#allocation3], 4294967040  ;;  %v1280_v0 = vld [vmem:[#allocation2] sm:$0xff]  ;;  %vm40_vm0 = vcmask 261120   ;;  %v30_v2 = vld [vmem:[#allocation2 + $0x8] sm:$0xff]  ;;  %v55_v13 = vlaneseq  ;;  %vm65_vm1 = vcmask 1041409  }
  0x15   :  { %v1041_v1 = vld [vmem:[%s1366_s1] ss:$0 sm:$0xff]  ;;  %vm68_vm2 = vcmask 58368   ;;  %v1243_v23 = vmov 0   ;;  %v1289_v35 = vand.u32 4294901760, %v1280_v0  ;;  %v1291_v36 = vand.u32 4294901760, %v30_v2 }
  0x16   :  { %v38_v3 = vmul.f32 %v1041_v1, %v1280_v0  ;;  %v39_v4 = vmul.f32 %v1041_v1, %v30_v2  ;;  %v56_v14 = vand.u32 127, %v55_v13  ;;  %v58_v15 = vshrl.u32 %v55_v13, 7  ;;  %1155 = vset.pattern.permute.xlu0 %v1243_v23  ;;  %1154 = vset.pattern.permute.xlu1 %v1243_v23  ;;  %s1246_s0 = smov [#allocation6]  }
  0x17   :  { %v1244_v37 = vmov 0.0   ;;  %vm1245_vm3 = vmmov 0   ;;  %v178_v38 = vsub.f32 %v1280_v0, %v1289_v35  ;;  %v634_v39 = vsub.f32 %v30_v2, %v1291_v36  ;;  %s1028_s1 = sshll.u32 %s1246_s0, 4  ;;  %s1029_s1 = int_to_ptr.vmem [resolvable:$true] %s1028_s1 }
  0x18   :  { %v41_v5 = vsel %vm40_vm0, %v38_v3, 0.0  ;;  %v44_v6 = vsel %vm40_vm0, %v39_v4, 0.0  ;;  %v59_v16 = vsub.s32 %v56_v14, %v58_v15  ;;  %v75_v24 = vsub.s32 0, %v58_v15  ;;  %1096 = vmatprep.subr.mxu1 %v1244_v37  ;;  %1066 = vmatprep.subr.mxu0 %v1244_v37  ;;  %s1190_s28 = scalar_lea.vmem %s1029_s1, 32  ;;  %p1195_p9 = scmp.lt.s32.totalorder %s1029_s1, %s1029_s1 }
  0x19   :  { %42 = vadd.xlane.f32.xlu0 %v41_v5  ;;  %v79_v25 = vsub.s32 1, %v58_v15  ;;  %1097 = vmatpush3.msra.mxu1 %v1291_v36  ;;  %vm97_vm4 = vcmask 64512   ;;  %v179_v45 = vand.u32 4294901760, %v178_v38  ;;  %v635_v48 = vand.u32 4294901760, %v634_v39  ;;  %p1191_p8 = scmp.ne.s32.totalorder %s1029_s1, %s1190_s28  ;;  %p1196_p10 = scmp.lt.s32.totalorder %s1190_s28, %s1190_s28 }
  0x1a   :  { %1067 = vmatpush3.msra.mxu0 %v1289_v35  ;;  %1068 = vmatprep.mubr.msk.f32.mxu0 %vm1245_vm3, %v1244_v37 }
  0x1b   :  { %1098 = vmatprep.mubr.msk.f32.mxu1 %vm1245_vm3, %v1244_v37  ;;  %1101 = vmatprep.subr.mxu1 %v1244_v37  ;;  %v180_v53 = vsub.f32 %v178_v38, %v179_v45  ;;  %v636_v55 = vsub.f32 %v634_v39, %v635_v48  ;;  %p1197_p11 = por %p1196_p10, %p1195_p9 }
  0x1c   :  { %1071 = vmatprep.subr.mxu0 %v1244_v37 }
  0x1d   :  { %45 = vadd.xlane.f32.xlu0 %v44_v6  ;;  %v181_v59 = vand.u32 4294901760, %v180_v53  ;;  %v637_v61 = vand.u32 4294901760, %v636_v55  ;;  %p1198_p12 = pnand %p1197_p11, %p1191_p8 }
  0xa6   :  { %v43_v7 = vpop.xlane.xlu0 %42 }
  0xa7   :  { %1156 = vtanh.f32 %v43_v7 }
  0xaa   :  { %v46_v8 = vpop.xlane.xlu0 %45 }
  0xab   :  { %1158 = vtanh.f32 %v46_v8 }
  0xb1   :  { %v1157_v9 = vpop.eup %1156 }
  0xb2   :  { %v49_v10 = vmul.f32 1.442695, %v1157_v9 }
  0xb4   :  { %1160 = vpow2.f32 %v49_v10 }
  0xb5   :  { %v1159_v11 = vpop.eup %1158 }
  0xb6   :  { %v51_v12 = vmul.f32 1.442695, %v1159_v11 }
  0xb8   :  { %1162 = vpow2.f32 %v51_v12 }
  0xbe   :  { %v1161_v17 = vpop.eup %1160 }
  0xbf   :  { %v60_v19 = vrot.slane %v1161_v17, %v59_v16 }
  0xc2   :  { %v1163_v18 = vpop.eup %1162 }
  0xc3   :  { %v64_v20 = vrot.slane %v1163_v18, %v59_v16 }
  0xc5   :  { %v66_v21 = vsel %vm65_vm1, %v64_v20, %v60_v19 }
  0xc6   :  { %v69_v22 = vsel %vm68_vm2, %v66_v21, 0.0 }
  0xc7   :  { %70 = vadd.xlane.f32.xlu1 %v69_v22 }
 0x154   :  { %v71_v26 = vpop.xlane.xlu1 %70 }
 0x155   :  { %v76_v27 = vrot.slane %v71_v26, %v75_v24  ;;  %v80_v28 = vrot.slane %v71_v26, %v79_v25 }
 0x157   :  { %1164 = vrcp.f32 %v76_v27 }
 0x158   :  { %1166 = vrcp.f32 %v80_v28 }
 0x161   :  { %v1165_v29 = vpop.eup %1164 }
 0x162   :  { %v1167_v30 = vpop.eup %1166  ;;  %v84_v31 = vmul.f32 %v1165_v29, %v1161_v17 }
 0x163   :  { %v86_v32 = vmul.f32 %v1167_v30, %v1163_v18 }
 0x164   :  { %v87_v33 = vadd.f32 1e-10, %v84_v31 }
 0x165   :  { %v88_v34 = vadd.f32 1e-10, %v86_v32 }
 0x166   :  { %91 = vperm.xlu0 %1155, %v87_v33  }
 0x167   :  { %548 = vperm.xlu1 %1154, %v88_v34  }
 0x1e5   :  { %v92_v40 = vpop.permute.xlu0 %91 }
 0x1e6   :  { %v549_v41 = vpop.permute.xlu1 %548  ;;  %v96_v42 = vrot.slane %v92_v40, %v59_v16 }
 0x1e7   :  { %v553_v43 = vrot.slane %v549_v41, %v59_v16 }
 0x1e8   :  { %v98_v44 = vsel %vm97_vm4, %v96_v42, 0 }
 0x1e9   :  { %v554_v46 = vsel %vm97_vm4, %v553_v43, 0  ;;  %v166_v47 = vand.u32 4294901760, %v98_v44  ;;  %v1002_v49 = vsel %vm65_vm1, %v553_v43, %v96_v42 }
 0x1ea   :  { %v622_v50 = vand.u32 4294901760, %v554_v46  ;;  %1004 = vst.msk [vmem:[#allocation6] sm:$0x3] %vm68_vm2, %v1002_v49 }
 0x1eb   :  { %v167_v51 = vsub.f32 %v98_v44, %v166_v47 }
 0x1ec   :  { %v623_v52 = vsub.f32 %v554_v46, %v622_v50 }
 0x1ed   :  { %v168_v54 = vand.u32 4294901760, %v167_v51 }
 0x1ee   :  { %v624_v56 = vand.u32 4294901760, %v623_v52 }
 0x1ef   :  { %v169_v57 = vsub.f32 %v167_v51, %v168_v54 }
 0x1f0   :  { %v625_v58 = vsub.f32 %v623_v52, %v624_v56 }
 0x1f1   :  { %v170_v60 = vand.u32 4294901760, %v169_v57 }
 0x1f2   :  { %v626_v62 = vand.u32 4294901760, %v625_v58 }
 0x1f3   :  { %1069 = vmatmul.mubr.f32.vlgmr.msra.gmra.mrb[0].mxu0 %v170_v60 }
 0x1f4   :  { %1099 = vmatmul.mubr.f32.vlgmr.msra.gmra.mrb[0].mxu1 %v626_v62  ;;  %1072 = vmatpush3.msra.mxu0 %v181_v59 }
 0x1f5   :  { %1102 = vmatpush3.msra.mxu1 %v637_v61  ;;  %1073 = vmatprep.mubr.msk.f32.mxu0 %vm1245_vm3, %v1244_v37 }
 0x1f6   :  { %1103 = vmatprep.mubr.msk.f32.mxu1 %vm1245_vm3, %v1244_v37  ;;  %1106 = vmatprep.subr.mxu1 %v1244_v37 }
 0x1f7   :  { %1076 = vmatprep.subr.mxu0 %v1244_v37 }
 0x1fb   :  { %1074 = vmatmul.mubr.f32.vlgmr.msra.gmra.mrb[0].mxu0 %v166_v47 }
 0x1fc   :  { %1104 = vmatmul.mubr.f32.vlgmr.msra.gmra.mrb[0].mxu1 %v622_v50  ;;  %1077 = vmatpush3.msra.mxu0 %v178_v38 }
 0x1fd   :  { %1107 = vmatpush3.msra.mxu1 %v634_v39  ;;  %1078 = vmatprep.mubr.msk.f32.mxu0 %vm1245_vm3, %v1244_v37 }
 0x1fe   :  { %1108 = vmatprep.mubr.msk.f32.mxu1 %vm1245_vm3, %v1244_v37  ;;  %1111 = vmatprep.subr.mxu1 %v1244_v37 }
 0x1ff   :  { %1081 = vmatprep.subr.mxu0 %v1244_v37 }
 0x203   :  { %1079 = vmatmul.mubr.f32.vlgmr.msra.gmra.mrb[0].mxu0 %v167_v51 }
 0x204   :  { %1109 = vmatmul.mubr.f32.vlgmr.msra.gmra.mrb[0].mxu1 %v623_v52  ;;  %1082 = vmatpush3.msra.mxu0 %v1289_v35 }
 0x205   :  { %1112 = vmatpush3.msra.mxu1 %v1291_v36  ;;  %1083 = vmatprep.mubr.msk.f32.mxu0 %vm1245_vm3, %v1244_v37 }
 0x206   :  { %1113 = vmatprep.mubr.msk.f32.mxu1 %vm1245_vm3, %v1244_v37  ;;  %1116 = vmatprep.subr.mxu1 %v1244_v37 }
 0x207   :  { %1086 = vmatprep.subr.mxu0 %v1244_v37 }
 0x20b   :  { %1084 = vmatmul.mubr.f32.vlgmr.msra.gmra.mrb[0].mxu0 %v168_v54 }
 0x20c   :  { %1114 = vmatmul.mubr.f32.vlgmr.msra.gmra.mrb[0].mxu1 %v624_v56  ;;  %1087 = vmatpush3.msra.mxu0 %v179_v45 }
 0x20d   :  { %1117 = vmatpush3.msra.mxu1 %v635_v48  ;;  %1088 = vmatprep.mubr.msk.f32.mxu0 %vm1245_vm3, %v1244_v37 }
 0x20e   :  { %1118 = vmatprep.mubr.msk.f32.mxu1 %vm1245_vm3, %v1244_v37  ;;  %1121 = vmatprep.subr.mxu1 %v1244_v37 }
 0x20f   :  { %1091 = vmatprep.subr.mxu0 %v1244_v37 }
 0x213   :  { %1089 = vmatmul.mubr.f32.vlgmr.msra.gmra.mrb[0].mxu0 %v166_v47 }
 0x214   :  { %1119 = vmatmul.mubr.f32.vlgmr.msra.gmra.mrb[0].mxu1 %v622_v50  ;;  %1092 = vmatpush3.msra.mxu0 %v1289_v35 }
 0x215   :  { %1122 = vmatpush3.msra.mxu1 %v1291_v36  ;;  %1093 = vmatprep.mubr.msk.f32.mxu0 %vm1245_vm3, %v1244_v37 }
 0x216   :  { %1123 = vmatprep.mubr.msk.f32.mxu1 %vm1245_vm3, %v1244_v37 }
 0x21b   :  { %1094 = vmatmul.mubr.f32.vlgmr.msra.gmra.mrb[0].mxu0 %v166_v47 }
 0x21c   :  { %1124 = vmatmul.mubr.f32.vlgmr.msra.gmra.mrb[0].mxu1 %v622_v50 }
 0x21d   :  { %1201 = shalt.err (!%p1198_p12)
}
 0x21e   :  { %s1202_s4 = scalar_lea.hbm %s1368_s3, 32 }
 0x21f   :  { %p1203_p13 = scmp.ne.s32.totalorder %s1368_s3, %s1202_s4  ;;  %p1206_p0 = scmp.lt.u32.totalorder %s1202_s4, %s1368_s3 }
 0x221   :  { %p1208_p1 = pnand %p1206_p0, %p1203_p13 }
 0x223   :  { %1211 = shalt.err (!%p1208_p1)
}
 0x224   :  { %1031 = dma.vmem_to_hbm [thread:$0]  %s1029_s1, 32, %s1368_s3, [#allocation7]   ;;  %vm1010_vm5 = vcmask 254976  }
 0x225   :  { %s1247_s11 = smov [#allocation5]  }
 0x226   :  { %s1018_s12 = sshll.u32 %s1247_s11, 4  ;;  %s1019_s12 = int_to_ptr.vmem [resolvable:$true] %s1018_s12 }
 0x227   :  { %s1212_s13 = scalar_lea.vmem %s1019_s12, 32  ;;  %p1217_p3 = scmp.lt.s32.totalorder %s1019_s12, %s1019_s12 }
 0x228   :  { %p1213_p2 = scmp.ne.s32.totalorder %s1019_s12, %s1212_s13  ;;  %p1218_p4 = scmp.lt.s32.totalorder %s1212_s13, %s1212_s13 }
 0x22a   :  { %p1219_p5 = por %p1218_p4, %p1217_p3 }
 0x22c   :  { %p1220_p6 = pnand %p1219_p5, %p1213_p2 }
 0x2ee   :  { %v542_v63 = vpop.f32.mrb[0].mxu0 }
 0x2ef   :  { %v998_v0 = vpop.f32.mrb[0].mxu1  ;;  %v1095_v1 = vpop.f32.mrb[1].mxu0 }
 0x2f0   :  { %v1007_v2 = vrot.slane %v998_v0, 7  ;;  %v1125_v3 = vpop.f32.mrb[1].mxu1 }
 0x2f2   :  { %v1008_v4 = vsel %vm65_vm1, %v1007_v2, %v542_v63 }
 0x2f3   :  { %1011 = vst.msk [vmem:[#allocation5] sm:$0x3] %vm1010_vm5, %v1008_v4 }
 0x2f4   :  { %1223 = shalt.err (!%p1220_p6)
}
 0x2f5   :  { %s1224_s15 = scalar_lea.hbm %s1367_s2, 32 }
 0x2f6   :  { %p1225_p7 = scmp.ne.s32.totalorder %s1367_s2, %s1224_s15  ;;  %p1228_p8 = scmp.lt.u32.totalorder %s1224_s15, %s1367_s2 }
 0x2f8   :  { %p1230_p9 = pnand %p1228_p8, %p1225_p7 }
 0x2fa   :  { %1233 = shalt.err (!%p1230_p9)
}
 0x2fb   :  { %1021 = dma.vmem_to_hbm [thread:$0]  %s1019_s12, 32, %s1367_s2, [#allocation4]  }
 0x2fc   :  { %1236 = dma.done.wait [#allocation4], 32  }
 0x2fd   :  { %1237 = vsyncadd [#allocation4], 4294967264 }
 0x2fe   :  { %1238 = dma.done.wait [#allocation7], 32  }
 0x2ff   :  { %1239 = vsyncadd [#allocation7], 4294967264 }
 0x300   :  { %1038 = vsyncpa [#allocation3], 1 }
 0x301   :  { %1039 = vsyncpa [#allocation4], 1 }
 0x302   :  { %1040 = vsyncpa [#allocation7], 1 }

</bundles_post_ra>
